<compile_context>
chip_gen: v7x
topology: tpu7x:2x2x1
jax: 0.10.0
libtpu: 0.0.40
codegen_flags: <defaults>
</compile_context>

<pallas_src>
import functools

import jax
import jax.numpy as jnp
from jax.experimental import pallas as pl
from jax.experimental.pallas import tpu as pltpu


# Channel layout of the fused detector-head output (rows of the (16, H*W) map):
#   [0:1] cls, [1:5] bbox, [5:6] obj, [6:16] kps   (1 + 4 + 1 + 10 = 16)
_HEAD_SPLITS = ((0, 1), (1, 5), (5, 6), (6, 16))
_HEAD_CHANNELS = 16


def _roll_matches_jnp() -> bool:
    """One-time probe of pltpu.roll's lane-rotation convention.

    pltpu.roll is expected to follow jnp.roll semantics (out[i] = in[i - shift]).
    We verify that once on the actual backend so the conv tap shifts below are
    correct by construction on every TPU generation (cost: one tiny kernel).
    """
    def kernel(x_ref, o_ref):
        o_ref[...] = pltpu.roll(x_ref[...], 1, axis=1)

    x = jax.lax.broadcasted_iota(jnp.float32, (8, 128), 1)
    y = pl.pallas_call(
        kernel, out_shape=jax.ShapeDtypeStruct((8, 128), jnp.float32))(x)
    return bool(y[0, 0] == 127.0)


def _fused_yunet_kernel(x_ref, wdn_ref, bdn_ref, wll_ref, bll_ref,
                        wbb_ref, bbb_ref, whd_ref, bhd_ref,
                        out_ref, im2col_ref, *, H, W, roll_like_jnp):
    """Whole forward pass for one batch element, fully resident on-chip.

    x_ref:   (1, 3, H*W)                      lane-dense input image
    w*_ref:  conv weights as (Cout, 9*Cin)    (tap-major, channel-minor)
    b*_ref:  (Cout, 1)                        biases (broadcast over lanes)
    whd/bhd: fused 1x1 heads (16, 16) / (16, 1)
    out_ref: (1, 16, H*W)                     fused head output
    im2col_ref: (9*Cin, H*W) f32 VMEM scratch reused by the three 3x3 convs
    """
    HW = H * W

    # Lane-index helpers for the zero-padding boundary masks.  Computed once
    # and reused by all three convs (manual hoist — no per-stage re-broadcast).
    lane = jax.lax.broadcasted_iota(jnp.int32, (1, HW), 1)
    row = lane // W
    col = lane % W

    taps = []  # (static roll amount, validity mask) for the 9 kernel taps
    for di in range(3):
        for dj in range(3):
            s = (di - 1) * W + (dj - 1)                 # flat source offset
            amount = (-s) % HW if roll_like_jnp else s % HW
            valid = ((row + (di - 1) >= 0) & (row + (di - 1) < H) &
                     (col + (dj - 1) >= 0) & (col + (dj - 1) < W))
            taps.append((amount, valid))

    def conv3x3_relu(x, w_ref, b_ref):
        # x: (Cin, H*W) -> (Cout, H*W); one K = 9*Cin im2col matmul on the MXU.
        cin = x.shape[0]
        for t, (amount, valid) in enumerate(taps):
            shifted = x if amount == 0 else pltpu.roll(x, amount, axis=1)
            im2col_ref[t * cin:(t + 1) * cin, :] = jnp.where(valid, shifted, 0.0)
        y = jnp.dot(w_ref[...], im2col_ref[...],
                    preferred_element_type=jnp.float32) + b_ref[...]
        return jnp.maximum(y, 0.0)

    x = x_ref[0]                                   # (3, H*W)
    x = conv3x3_relu(x, wdn_ref, bdn_ref)          # denoiser      (3 -> 3)
    x = conv3x3_relu(x, wll_ref, bll_ref)          # lle_enhancer  (3 -> 3)
    f = conv3x3_relu(x, wbb_ref, bbb_ref)          # backbone      (3 -> 16)

    # Fused 1x1 heads: one (16, 16) @ (16, H*W) matmul, lane-dense store.
    out_ref[0] = jnp.dot(whd_ref[...], f,
                         preferred_element_type=jnp.float32) + bhd_ref[...]


def patched_independent_yunet_forward(img, params, rescale=False, *,
                                      roll_like_jnp=True):
    """JAX/Pallas equivalent of Patched_IndependentYuNet.forward."""
    del rescale                                   # unused, mirrors torch signature
    if isinstance(img, (list, tuple)):            # mirrors the torch `list` branch
        img = img[0]
    n, c, h, w = img.shape
    hw = h * w
    # NCHW -> (N, C, H*W): channels on sublanes, spatial on lanes.  Pure
    # reshape (no transpose, no jnp.pad); border handling lives in the kernel.
    x = img.astype(jnp.float32).reshape(n, c, hw)

    def conv_w(name):
        # OIHW -> (O, 9*I), tap-major / channel-minor: matches im2col row order.
        wt = params[name]
        return jnp.transpose(wt, (0, 2, 3, 1)).reshape(wt.shape[0], -1)

    def col_b(name):
        return params[name].reshape(-1, 1)

    operands = (
        x,
        conv_w("dn_w"), col_b("dn_b"),
        conv_w("lle_w"), col_b("lle_b"),
        conv_w("bb_w"), col_b("bb_b"),
        params["hd_w"], col_b("hd_b"),
    )
    # Image: one batch element per grid step.  Weights / biases: full-array
    # blocks with constant index_maps -> resident in VMEM across all steps.
    in_specs = [pl.BlockSpec((1, c, hw), lambda i: (i, 0, 0))]
    in_specs += [pl.BlockSpec(op.shape, lambda i: (0, 0)) for op in operands[1:]]

    # TODO(synk): at real YuNet resolutions (e.g. 640x640) the whole-frame block
    # no longer fits in VMEM (64 MiB/TC on v7x); tile H*W on the lane axis with
    # halo rows and raise vmem_limit_bytes instead of this single-block layout.
    fused = pl.pallas_call(
        functools.partial(_fused_yunet_kernel, H=h, W=w,
                          roll_like_jnp=roll_like_jnp),
        out_shape=jax.ShapeDtypeStruct((n, _HEAD_CHANNELS, hw), jnp.float32),
        grid=(n,),
        in_specs=in_specs,
        out_specs=pl.BlockSpec((1, _HEAD_CHANNELS, hw), lambda i: (i, 0, 0)),
        scratch_shapes=[pltpu.VMEM((9 * c, hw), jnp.float32)],   # im2col buffer
        compiler_params=pltpu.CompilerParams(
            dimension_semantics=("parallel",)),   # batch across cores on v7x
    )(*operands)

    # (N, 16, H*W) -> (N, H*W, 16) in the wrapper (keeps the kernel's stores
    # lane-dense / unmasked), then split the fused channels into the 4 heads.
    preds = jnp.transpose(fused, (0, 2, 1))
    cls_p, bbox_p, obj_p, kps_p = (preds[..., a:b] for a, b in _HEAD_SPLITS)
    return cls_p, bbox_p, obj_p, kps_p


# ----------------------------------------------------------------------------
# Deterministic synthetic parameters + pure-JAX reference (ground truth)
# ----------------------------------------------------------------------------
def make_params():
    keys = jax.random.split(jax.random.PRNGKey(0), 8)

    def conv_init(kw, kb, o, i):
        wgt = jax.random.normal(kw, (o, i, 3, 3), jnp.float32) * 0.1
        bias = jax.random.normal(kb, (o,), jnp.float32) * 0.01
        return wgt, bias

    dn_w, dn_b = conv_init(keys[0], keys[1], 3, 3)
    lle_w, lle_b = conv_init(keys[2], keys[3], 3, 3)
    bb_w, bb_b = conv_init(keys[4], keys[5], 16, 3)
    hd_w = jax.random.normal(keys[6], (_HEAD_CHANNELS, 16), jnp.float32) * 0.1
    hd_b = jax.random.normal(keys[7], (_HEAD_CHANNELS,), jnp.float32) * 0.01
    return dict(dn_w=dn_w, dn_b=dn_b, lle_w=lle_w, lle_b=lle_b,
                bb_w=bb_w, bb_b=bb_b, hd_w=hd_w, hd_b=hd_b)


def _reference_forward(img, params):
    """Pure-JAX ground truth with torch conv2d(pad=1) semantics."""
    if isinstance(img, (list, tuple)):
        img = img[0]

    def conv3(x, wgt, bias):
        y = jax.lax.conv_general_dilated(
            x, wgt, window_strides=(1, 1), padding=((1, 1), (1, 1)),
            dimension_numbers=("NCHW", "OIHW", "NCHW"))
        return y + bias[None, :, None, None]

    x = img.astype(jnp.float32)
    x = jax.nn.relu(conv3(x, params["dn_w"], params["dn_b"]))
    x = jax.nn.relu(conv3(x, params["lle_w"], params["lle_b"]))
    f = jax.nn.relu(conv3(x, params["bb_w"], params["bb_b"]))
    y = (jnp.einsum("oc,nchw->nohw", params["hd_w"], f)
         + params["hd_b"][None, :, None, None])
    n, c, hh, ww = y.shape
    flat = jnp.transpose(y, (0, 2, 3, 1)).reshape(n, hh * ww, c)
    return tuple(flat[..., a:b] for a, b in _HEAD_SPLITS)


if __name__ == "__main__":
    params = make_params()
    img = jax.random.uniform(jax.random.PRNGKey(0), (2, 3, 16, 16),
                             jnp.float32) * 255.0

    roll_like_jnp = _roll_matches_jnp()
    fwd = jax.jit(functools.partial(patched_independent_yunet_forward,
                                    params=params,
                                    roll_like_jnp=roll_like_jnp))
    outs = fwd(img)
    jax.block_until_ready(outs)

    cls_p, bbox_p, obj_p, kps_p = outs
    assert cls_p.shape == (2, 256, 1)
    assert bbox_p.shape == (2, 256, 4)
    assert obj_p.shape == (2, 256, 1)
    assert kps_p.shape == (2, 256, 10)

    refs = _reference_forward(img, params)
    for name, o, r in zip(("cls", "bbox", "obj", "kps"), outs, refs):
        max_err = float(jnp.max(jnp.abs(o - r)))
        assert jnp.allclose(o, r, rtol=5e-2, atol=5e-1), (name, max_err)

    print("KERNEL_OK")
</pallas_src>

<mosaic_0001>
module attributes {stable_mosaic.version = 11 : i64} {
  func.func @kernel(%arg0: memref<8x128xf32, #tpu.memory_space<vmem>>, %arg1: memref<8x128xf32, #tpu.memory_space<vmem>>) attributes {dimension_semantics = [], scalar_prefetch = 0 : i64, scratch_operands = 0 : i64, tpu.core_type = #tpu.core_type<tc>} {
    %c0 = arith.constant 0 : index
    %c0_0 = arith.constant 0 : index
    %0 = vector.load %arg0[%c0, %c0_0] : memref<8x128xf32, #tpu.memory_space<vmem>>, vector<8x128xf32>
    %c1_i32 = arith.constant 1 : i32
    %1 = tpu.dynamic_rotate %0 by %c1_i32 dim 1 : vector<8x128xf32>, i32 -> vector<8x128xf32>
    %c0_1 = arith.constant 0 : index
    %c0_2 = arith.constant 0 : index
    %2 = vector.load %arg1[%c0_1, %c0_2] : memref<8x128xf32, #tpu.memory_space<vmem>>, vector<8x128xf32>
    tpu.vector_store %arg1[%c0_1, %c0_2], %1 {strides = array<i32>} : memref<8x128xf32, #tpu.memory_space<vmem>>, vector<8x128xf32>,
    return
  }
}

</mosaic_0001>

<bundles_post_ra>
// kernel: tpu_custom_call.1
= control target key start
LH: loop header
LB: loop body
LE: loop exit
PB: predicated region body
PF: predicated region fallthrough
CT: control target
= control target key end

     0   :  { %6 = vsyncpa [#allocation3], 0  ;;  %s128_s0 = inlined_call_operand.hbm [shape: f32[8,128], index: 0, kind: input, shape index: {}]   ;;  %s129_s1 = inlined_call_operand.hbm [shape: f32[8,128], index: 1, kind: output, shape index: {}]  }
   0x1   :  { %7 = vsyncpa [#allocation4], 0  ;;  %s91_s6 = smov [#allocation2]   ;;  %s43_s10 = scalar_lea.hbm %s128_s0, 128 }
   0x2   :  { %s14_s7 = sshll.u32 %s91_s6, 4  ;;  %p44_p0 = scmp.ne.s32.totalorder %s128_s0, %s43_s10  ;;  %s15_s7 = int_to_ptr.vmem [resolvable:$true] %s14_s7 }
   0x3   :  { %p47_p1 = scmp.lt.u32.totalorder %s43_s10, %s128_s0 }
   0x5   :  { %p49_p2 = pnand %p47_p1, %p44_p0 }
   0x7   :  { %52 = shalt.err (!%p49_p2)
}
   0x8   :  { %s53_s15 = scalar_lea.vmem %s15_s7, 128  ;;  %p58_p4 = scmp.lt.s32.totalorder %s15_s7, %s15_s7 }
   0x9   :  { %p54_p3 = scmp.ne.s32.totalorder %s15_s7, %s53_s15  ;;  %p59_p5 = scmp.lt.s32.totalorder %s53_s15, %s53_s15 }
   0xb   :  { %p60_p6 = por %p59_p5, %p58_p4 }
   0xd   :  { %p61_p7 = pnand %p60_p6, %p54_p3 }
   0xf   :  { %64 = shalt.err (!%p61_p7)
}
  0x10   :  { %17 = dma.hbm_to_vmem [thread:$0]  %s128_s0, 128, %s15_s7, [#allocation3]  }
  0x11   :  { %87 = dma.done.wait [#allocation3], 128  }
  0x12   :  { %88 = vsyncadd [#allocation3], 4294967168  ;;  %v21_v0 = vld [vmem:[#allocation2] sm:$0xff]  ;;  %s92_s18 = smov 1   ;;  %s93_s19 = smov [#allocation5]  }
  0x13   :  { %22 = vrot.lane.b32.xlu0 %v21_v0, %s92_s18  ;;  %s31_s20 = sshll.u32 %s93_s19, 4  ;;  %s32_s20 = int_to_ptr.vmem [resolvable:$true] %s31_s20 }
  0x14   :  { %s65_s21 = scalar_lea.vmem %s32_s20, 128  ;;  %p70_p9 = scmp.lt.s32.totalorder %s32_s20, %s32_s20 }
  0x15   :  { %p66_p8 = scmp.ne.s32.totalorder %s32_s20, %s65_s21  ;;  %p71_p10 = scmp.lt.s32.totalorder %s65_s21, %s65_s21 }
  0x17   :  { %p72_p11 = por %p71_p10, %p70_p9 }
  0x19   :  { %p73_p12 = pnand %p72_p11, %p66_p8 }
  0x85   :  { %v23_v1 = vpop.permute.xlu0 %22 }
  0x86   :  { %24 = vst [vmem:[#allocation5] sm:$0xff] %v23_v1 }
  0x87   :  { %76 = shalt.err (!%p73_p12)
}
  0x88   :  { %s77_s0 = scalar_lea.hbm %s129_s1, 128 }
  0x89   :  { %p78_p13 = scmp.ne.s32.totalorder %s129_s1, %s77_s0  ;;  %p81_p0 = scmp.lt.u32.totalorder %s77_s0, %s129_s1 }
  0x8b   :  { %p83_p1 = pnand %p81_p0, %p78_p13 }
  0x8d   :  { %86 = shalt.err (!%p83_p1)
}
  0x8e   :  { %34 = dma.vmem_to_hbm [thread:$0]  %s32_s20, 128, %s129_s1, [#allocation4]  }
  0x8f   :  { %89 = dma.done.wait [#allocation4], 128  }
  0x90   :  { %90 = vsyncadd [#allocation4], 4294967168 }
  0x91   :  { %38 = vsyncpa [#allocation3], 1 }
  0x92   :  { %39 = vsyncpa [#allocation4], 1 }

</bundles_post_ra>
